<compile_context>
chip_gen: v7x
topology: tpu7x:2x2x1
jax: 0.10.0
libtpu: 0.0.40
codegen_flags: <defaults>
</compile_context>

<pallas_src>
import functools

import jax
import jax.numpy as jnp
from jax.experimental import pallas as pl
from jax.experimental.pallas import tpu as pltpu


def _split_dma_kernel(x_ref, o1_ref, o2_ref, sems, *, bn, bn_tail, n_chunks,
                      pieces1, pieces2):
    # x_ref:  (N, F)  in HBM   (F = C*H*W, flattened per-batch features)
    # o1_ref: (N, f1) in HBM   (f1 = c*H*W)      -> x[:, :c] flattened
    # o2_ref: (N, f2) in HBM   (f2 = (C-c)*H*W)  -> x[:, c:] flattened
    # sems:   DMA semaphores, shape (2, max_pieces)
    # pieces*: static tuples of (col_off_in_x, col_off_in_out, col_len)
    i = pl.program_id(0)
    row0 = i * bn  # dynamic row offset, static sizes below

    def run(rows):
        # Start every DMA for this step before waiting on any of them so
        # 2*len(pieces) copies (up to 8) are in flight concurrently.  All
        # semaphore state is produced and consumed inside this grid step, so
        # it is safe with the "parallel" axis / megacore.
        copies = []
        for out_idx, (o_ref, pieces) in enumerate(
                ((o1_ref, pieces1), (o2_ref, pieces2))):
            for s, (xoff, ooff, ln) in enumerate(pieces):
                cp = pltpu.make_async_copy(
                    x_ref.at[pl.ds(row0, rows), pl.ds(xoff, ln)],
                    o_ref.at[pl.ds(row0, rows), pl.ds(ooff, ln)],
                    sems.at[out_idx, s],
                )
                cp.start()
                copies.append(cp)
        for cp in copies:
            cp.wait()

    if bn == bn_tail:
        # Uniform chunks: single code path.
        run(bn)
    else:
        # Ragged tail: last chunk copies fewer rows (static sizes per branch).
        @pl.when(i < n_chunks - 1)
        def _():
            run(bn)

        @pl.when(i == n_chunks - 1)
        def _():
            run(bn_tail)


def split_block(x: jax.Array, ratio: float, *,
                min_pallas_bytes: int = 2 * 1024 * 1024,
                min_dma_bytes: int = 512 * 1024):
    """Pallas equivalent of SplitBlock(ratio).forward(x) for NCHW input."""
    N, C, H, W = x.shape
    c = int(C * ratio)  # same truncation semantics as int(x.size(1) * ratio)

    # Degenerate split: one side has zero channels; Mosaic can't lower a
    # zero-sized output, so fall back to plain XLA slicing.
    if c <= 0 or c >= C:
        return x[:, :c, :, :], x[:, c:, :, :]

    itemsize = x.dtype.itemsize
    total_bytes = N * C * H * W * itemsize

    # Small-tensor fallback: the fixed pallas_call + DMA setup cost (several
    # microseconds) dwarfs the copy for small activations; let XLA fuse the
    # view-like slice into consumers instead.
    if total_bytes < min_pallas_bytes:
        return x[:, :c, :, :], x[:, c:, :, :]

    F = C * H * W
    f1 = c * H * W
    f2 = F - f1

    # Free reshape: NCHW is row-major contiguous, so each channel-split half
    # is a contiguous column slice of every flattened batch row.
    x_flat = x.reshape(N, F)

    # One row-chunk per TensorCore.  Grid steps on a single core run
    # sequentially and each fully drains its DMAs, so more steps per core is
    # pure overhead; 2 chunks lets both v7x TCs issue DMAs, and on single-TC
    # v5e/v6e it only costs one extra ~1 us step over the single-DMA form.
    n_chunks = 2 if N >= 2 else 1
    bn = -(-N // n_chunks)            # rows per chunk (ceil)
    n_chunks = -(-N // bn)            # actual number of chunks
    bn_tail = N - (n_chunks - 1) * bn  # ragged last chunk, 1 <= bn_tail <= bn

    # Split each output's columns into up to MAX_PIECES static pieces so that
    # several DMAs are in flight per step (hides issue latency), but keep
    # every DMA >= ~min_dma_bytes so descriptors stay large / burst-efficient.
    MAX_PIECES = 4

    def make_pieces(width, base_off):
        step_bytes = bn * width * itemsize
        sub = int(min(MAX_PIECES,
                      max(1, step_bytes // max(1, min_dma_bytes)),
                      width))
        q, r = divmod(width, sub)
        pieces, off = [], 0
        for s in range(sub):
            ln = q + (1 if s < r else 0)
            pieces.append((base_off + off, off, ln))
            off += ln
        return tuple(pieces)

    pieces1 = make_pieces(f1, 0)
    pieces2 = make_pieces(f2, f1)
    max_pieces = max(len(pieces1), len(pieces2))

    kernel = functools.partial(
        _split_dma_kernel,
        bn=bn, bn_tail=bn_tail, n_chunks=n_chunks,
        pieces1=pieces1, pieces2=pieces2,
    )

    out1_flat, out2_flat = pl.pallas_call(
        kernel,
        out_shape=(
            jax.ShapeDtypeStruct((N, f1), x.dtype),
            jax.ShapeDtypeStruct((N, f2), x.dtype),
        ),
        grid_spec=pltpu.PrefetchScalarGridSpec(
            num_scalar_prefetch=0,
            grid=(n_chunks,),
            in_specs=[pl.BlockSpec(memory_space=pl.ANY)],
            out_specs=[
                pl.BlockSpec(memory_space=pl.ANY),
                pl.BlockSpec(memory_space=pl.ANY),
            ],
            scratch_shapes=[pltpu.SemaphoreType.DMA((2, max_pieces))],
        ),
        compiler_params=pltpu.CompilerParams(
            dimension_semantics=("parallel",)
        ),
    )(x_flat)

    return (
        out1_flat.reshape(N, c, H, W),
        out2_flat.reshape(N, C - c, H, W),
    )


if __name__ == "__main__":
    key = jax.random.PRNGKey(0)
    key_a, key_b = jax.random.split(key)
    ratio = 0.5

    def reference(x, ratio):
        c = int(x.shape[1] * ratio)
        return x[:, :c, :, :], x[:, c:, :, :]

    # 1) Required small shape; force the Pallas path (the default would take
    #    the small-tensor XLA fallback for an 8 KB activation).
    x = jax.random.normal(key_a, (2, 4, 16, 16), dtype=jnp.float32)
    out1, out2 = split_block(x, ratio, min_pallas_bytes=0)
    jax.block_until_ready((out1, out2))
    ref1, ref2 = reference(x, ratio)
    assert out1.shape == ref1.shape and out2.shape == ref2.shape
    assert out1.dtype == x.dtype and out2.dtype == x.dtype
    assert jnp.array_equal(out1, ref1)
    assert jnp.array_equal(out2, ref2)

    # 2) Odd batch (exercises the ragged tail chunk) + tiny min_dma_bytes to
    #    force the multi-piece (multiple in-flight DMAs) path.
    x2 = jax.random.normal(key_b, (3, 6, 16, 16), dtype=jnp.float32)
    o1, o2 = split_block(x2, ratio, min_pallas_bytes=0, min_dma_bytes=1)
    jax.block_until_ready((o1, o2))
    r1, r2 = reference(x2, ratio)
    assert jnp.array_equal(o1, r1) and jnp.array_equal(o2, r2)

    # 3) Default small-tensor XLA fallback and degenerate ratio fallback.
    o1, o2 = split_block(x, ratio)  # takes fallback (8 KB < threshold)
    r1, r2 = reference(x, ratio)
    assert jnp.array_equal(o1, r1) and jnp.array_equal(o2, r2)
    o1, o2 = split_block(x, 0.0)    # c == 0 -> degenerate fallback
    assert o1.shape == (2, 0, 16, 16) and jnp.array_equal(o2, x)

    print("KERNEL_OK")
</pallas_src>

<mosaic_0001>
module attributes {stable_mosaic.version = 11 : i64} {
  func.func @_split_dma_kernel(%arg0: i32, %arg1: memref<2x1024xf32, #tpu.memory_space<any>>, %arg2: memref<2x512xf32, #tpu.memory_space<any>>, %arg3: memref<2x512xf32, #tpu.memory_space<any>>, %arg4: memref<2x1x!tpu.dma_semaphore, #tpu.memory_space<semaphore_mem>>) attributes {dimension_semantics = [#tpu.dimension_semantics<parallel>], iteration_bounds = array<i64: 2>, scalar_prefetch = 0 : i64, scratch_operands = 1 : i64, tpu.core_type = #tpu.core_type<tc>, window_params = [{}, {}, {}]} {
    %c1_i32 = arith.constant 1 : i32
    %0 = arith.muli %arg0, %c1_i32 : i32
    %c0_i32 = arith.constant 0 : i32
    %c0_i32_0 = arith.constant 0 : i32
    %c0_i32_1 = arith.constant 0 : i32
    %1 = tpu.memref_slice %arg1[%0, %c0_i32_1] : memref<2x1024xf32, #tpu.memory_space<any>> -> memref<1x512xf32, #tpu.memory_space<any>>
    %c0_i32_2 = arith.constant 0 : i32
    %2 = tpu.memref_slice %arg2[%0, %c0_i32_2] : memref<2x512xf32, #tpu.memory_space<any>> -> memref<1x512xf32, #tpu.memory_space<any>>
    %3 = tpu.memref_slice %arg4[%c0_i32, %c0_i32_0] : memref<2x1x!tpu.dma_semaphore, #tpu.memory_space<semaphore_mem>> -> memref<1x1x!tpu.dma_semaphore, #tpu.memory_space<semaphore_mem>>
    %4 = tpu.memref_squeeze %3 : memref<1x1x!tpu.dma_semaphore, #tpu.memory_space<semaphore_mem>> -> memref<!tpu.dma_semaphore, #tpu.memory_space<semaphore_mem>>
    tpu.enqueue_dma source(%1 : memref<1x512xf32, #tpu.memory_space<any>>) target(%2 : memref<1x512xf32, #tpu.memory_space<any>>) target_semaphore(%4 : memref<!tpu.dma_semaphore, #tpu.memory_space<semaphore_mem>>)
    %c1_i32_3 = arith.constant 1 : i32
    %c0_i32_4 = arith.constant 0 : i32
    %c512_i32 = arith.constant 512 : i32
    %5 = tpu.memref_slice %arg1[%0, %c512_i32] : memref<2x1024xf32, #tpu.memory_space<any>> -> memref<1x512xf32, #tpu.memory_space<any>>
    %c0_i32_5 = arith.constant 0 : i32
    %6 = tpu.memref_slice %arg3[%0, %c0_i32_5] : memref<2x512xf32, #tpu.memory_space<any>> -> memref<1x512xf32, #tpu.memory_space<any>>
    %7 = tpu.memref_slice %arg4[%c1_i32_3, %c0_i32_4] : memref<2x1x!tpu.dma_semaphore, #tpu.memory_space<semaphore_mem>> -> memref<1x1x!tpu.dma_semaphore, #tpu.memory_space<semaphore_mem>>
    %8 = tpu.memref_squeeze %7 : memref<1x1x!tpu.dma_semaphore, #tpu.memory_space<semaphore_mem>> -> memref<!tpu.dma_semaphore, #tpu.memory_space<semaphore_mem>>
    tpu.enqueue_dma source(%5 : memref<1x512xf32, #tpu.memory_space<any>>) target(%6 : memref<1x512xf32, #tpu.memory_space<any>>) target_semaphore(%8 : memref<!tpu.dma_semaphore, #tpu.memory_space<semaphore_mem>>)
    %c0_i32_6 = arith.constant 0 : i32
    %c0_i32_7 = arith.constant 0 : i32
    %c0_i32_8 = arith.constant 0 : i32
    %9 = tpu.memref_slice %arg1[%0, %c0_i32_8] : memref<2x1024xf32, #tpu.memory_space<any>> -> memref<1x512xf32, #tpu.memory_space<any>>
    %c0_i32_9 = arith.constant 0 : i32
    %10 = tpu.memref_slice %arg2[%0, %c0_i32_9] : memref<2x512xf32, #tpu.memory_space<any>> -> memref<1x512xf32, #tpu.memory_space<any>>
    %11 = tpu.memref_slice %arg4[%c0_i32_6, %c0_i32_7] : memref<2x1x!tpu.dma_semaphore, #tpu.memory_space<semaphore_mem>> -> memref<1x1x!tpu.dma_semaphore, #tpu.memory_space<semaphore_mem>>
    %12 = tpu.memref_squeeze %11 : memref<1x1x!tpu.dma_semaphore, #tpu.memory_space<semaphore_mem>> -> memref<!tpu.dma_semaphore, #tpu.memory_space<semaphore_mem>>
    tpu.wait_dma2 semaphore(%12 : memref<!tpu.dma_semaphore, #tpu.memory_space<semaphore_mem>>) src(%9 : memref<1x512xf32, #tpu.memory_space<any>>) dst(%10 : memref<1x512xf32, #tpu.memory_space<any>>)
    %c1_i32_10 = arith.constant 1 : i32
    %c0_i32_11 = arith.constant 0 : i32
    %c512_i32_12 = arith.constant 512 : i32
    %13 = tpu.memref_slice %arg1[%0, %c512_i32_12] : memref<2x1024xf32, #tpu.memory_space<any>> -> memref<1x512xf32, #tpu.memory_space<any>>
    %c0_i32_13 = arith.constant 0 : i32
    %14 = tpu.memref_slice %arg3[%0, %c0_i32_13] : memref<2x512xf32, #tpu.memory_space<any>> -> memref<1x512xf32, #tpu.memory_space<any>>
    %15 = tpu.memref_slice %arg4[%c1_i32_10, %c0_i32_11] : memref<2x1x!tpu.dma_semaphore, #tpu.memory_space<semaphore_mem>> -> memref<1x1x!tpu.dma_semaphore, #tpu.memory_space<semaphore_mem>>
    %16 = tpu.memref_squeeze %15 : memref<1x1x!tpu.dma_semaphore, #tpu.memory_space<semaphore_mem>> -> memref<!tpu.dma_semaphore, #tpu.memory_space<semaphore_mem>>
    tpu.wait_dma2 semaphore(%16 : memref<!tpu.dma_semaphore, #tpu.memory_space<semaphore_mem>>) src(%13 : memref<1x512xf32, #tpu.memory_space<any>>) dst(%14 : memref<1x512xf32, #tpu.memory_space<any>>)
    return
  }
}

</mosaic_0001>

<bundles_post_ra>
// kernel: tpu_custom_call.1
= control target key start
LH: loop header
LB: loop body
LE: loop exit
PB: predicated region body
PF: predicated region fallthrough
CT: control target
= control target key end

     0   :  { %s167_s9 = smov 0   ;;  %s186_s0 = inlined_call_operand.hbm [shape: f32[2,1024], index: 0, kind: input, shape index: {}]   ;;  %s187_s1 = inlined_call_operand.hbm [shape: f32[2,512], index: 1, kind: output, shape index: {0}]   ;;  %s188_s2 = inlined_call_operand.hbm [shape: f32[2,512], index: 2, kind: output, shape index: {1}]  }
   0x1 LB: > { %s15_s10 = sshrl.u32 %s143_s9, 1  ;;  %s16_s11 = sand.u32 1, %s143_s9   ;;  %s143_s9 = sphi %s167_s9, %s13_s9  }
   0x2   : > { %s109_s12 = sshll.u32 %s15_s10, 4  ;;  %s111_s13 = sshll.u32 %s15_s10, 3 }
   0x3   : > { %s18_s14 = sadd.s32 %s109_s12, %s16_s11  ;;  %s22_s15 = sadd.s32 %s111_s13, %s16_s11 }
   0x4   : > { %s110_s16 = sshll.u32 %s18_s14, 4  ;;  %s112_s17 = sshll.u32 %s22_s15, 4 }
   0x5   : > { %s20_s20 = scalar_lea.hbm %s186_s0, %s110_s16  ;;  %s24_s23 = scalar_lea.hbm %s187_s1, %s112_s17 }
   0x6   : > { %s145_s24 = smov 32   ;;  %s146_s25 = smov 1  }
   0x7   : > { %37 = sst [smem:[#allocation4]] %s145_s24  ;;  %s147_s26 = smov [#allocation2]  }
   0x8   : > { %39 = sst [smem:[#allocation4 + $0x1]] %s145_s24  ;;  %s148_s27 = smov [#allocation3]  }
   0x9   : > { %41 = sst [smem:[#allocation4 + $0x2]] %s146_s25  ;;  %s149_s28 = smov 0  }
   0xa   : > { %43 = dma.general %s20_s20, 64, %s24_s23, %s147_s26, %s148_s27, [#allocation4], %s149_s28, 0  }
   0xb   : > { %s99_s29 = scalar_lea.hbm %s20_s20, 128  ;;  %s48_s4 = scalar_lea.hbm %s188_s2, %s112_s17 }
   0xc   : > { %62 = sst [smem:[#allocation6]] %s145_s24  ;;  %s150_s5 = smov [#allocation2 + $0x1]  }
   0xd   : > { %64 = sst [smem:[#allocation6 + $0x1]] %s145_s24  ;;  %s151_s6 = smov [#allocation5]  }
   0xe   : > { %66 = sst [smem:[#allocation6 + $0x2]] %s146_s25 }
   0xf   : > { %68 = dma.general %s99_s29, 64, %s48_s4, %s150_s5, %s151_s6, [#allocation6], %s149_s28, 0  }
  0x10   : > { %137 = dma.done.wait [#allocation2], 64 }
  0x11   : > { %138 = vsyncadd [#allocation2], 4294967232 }
  0x12   : > { %139 = dma.done.wait [#allocation2 + $0x1], 64 }
  0x13   : > { %140 = vsyncadd [#allocation2 + $0x1], 4294967232  ;;  %s13_s9 = sadd.s32 1, %s143_s9  }
  0x14   : > { %p10_p0 = scmp.ge.s32.totalorder %s13_s9, 2  }
  0x16   :  { %12 = sbr.rel (!%p10_p0) target bundleno = 1 (0x1), region = 29 }
  0x1d   :  { %74 = vsyncmov [#allocation2] }
  0x20   :  { %s75_s7 = vpop.sfrf %74 }
  0x21   :  { %p116_p1 = scmp.ne.s32.totalorder %s75_s7, 0 }
  0x23   :  { %79 = shalt.err (%p116_p1)  }
  0x24   :  { %81 = vsyncmov [#allocation2 + $0x1] }
  0x27   :  { %s82_s8 = vpop.sfrf %81 }
  0x28   :  { %p117_p2 = scmp.ne.s32.totalorder %s82_s8, 0 }
  0x2a   :  { %86 = shalt.err (%p117_p2)  }

</bundles_post_ra>
